<compile_context>
chip_gen: v6e
topology: v6e:2x2x1
jax: 0.10.0
libtpu: 0.0.40
codegen_flags: <defaults>
</compile_context>

<pallas_src>
import functools

import jax
import jax.numpy as jnp
from jax.experimental import pallas as pl
from jax.experimental.pallas import tpu as pltpu


def _round_up(v, m):
    return (v + m - 1) // m * m


def _cam_kernel(x1_ref, x2_ref, w1t_ref, w2t_ref, w3_ref, out_ref, *, inv_hw):
    """One batch element: add, global-avg-pool, SE gate folded into conv3."""
    # HBM I/O is bf16; do add / pooling arithmetic in f32 (v5e-friendly).
    x = x1_ref[0].astype(jnp.float32) + x2_ref[0].astype(jnp.float32)  # (C, HW)

    # AdaptiveAvgPool2d(1): lane reduction over the spatial axis.
    avg = jnp.sum(x, axis=1, keepdims=True) * inv_hw                   # (C, 1)

    # conv1 (1x1) + ReLU as VPU broadcast-multiply + cross-sublane reduce:
    #   a_row[0, k] = sum_i w1[k, i] * avg[i]     (w1 passed pre-transposed)
    # Keeps the tiny SE chain off the MXU and lands the result as a (1, C)
    # row, which is exactly the layout the gate fold below needs.
    a_row = jnp.maximum(
        jnp.sum(w1t_ref[...] * avg, axis=0, keepdims=True), 0.0)       # (1, C)

    # conv2 (1x1) + Sigmoid; one tiny row-vector MXU dot (w2 pre-transposed).
    z_row = jnp.dot(a_row, w2t_ref[...],
                    preferred_element_type=jnp.float32)                # (1, C)
    gate = pl.reciprocal(1.0 + jnp.exp(-z_row), approx=True)           # sigmoid

    # block4 = x*(1+gate); conv3(block4) == (w3 * (1+gate)_row) @ x:
    # fold the per-channel gate into w3's columns (C*C VALU work instead of
    # C*HW) and feed the MXU bf16 operands with f32 accumulation.
    w3g = (w3_ref[...] * (1.0 + gate)).astype(jnp.bfloat16)            # (C, C)
    out_ref[0] = jnp.dot(w3g, x.astype(jnp.bfloat16),
                         preferred_element_type=jnp.float32)           # (C, HW)


def _pick_vmem_limit_bytes():
    """~75% of physical VMEM: 48 MiB on v7x (64 MiB/TC), 96 MiB on v5e/v6e."""
    try:
        cap = int(pltpu.get_tpu_info().vmem_capacity_bytes)
    except Exception:
        cap = 64 << 20  # conservative fallback (v7x per-TC)
    return min((cap * 3) // 4, 112 << 20)


def channel_attention_forward(x1_nchw, x2_nchw, params):
    """x1, x2: (N, C, H, W). Returns (N, C, H, W) float32."""
    N, C, H, W = x1_nchw.shape
    HW = H * W
    # Tile-friendly padding: C to the bf16 sublane pack (16), HW to the lane
    # width (128) so the output store is lane-dense and unmasked.
    Cp, HWp = _round_up(C, 16), _round_up(HW, 128)

    x1 = x1_nchw.reshape(N, C, HW)
    x2 = x2_nchw.reshape(N, C, HW)
    if (Cp, HWp) != (C, HW):
        pad = ((0, 0), (0, Cp - C), (0, HWp - HW))
        x1 = jnp.pad(x1, pad)
        x2 = jnp.pad(x2, pad)
    # bf16 HBM I/O for the big activations (the kernel is bandwidth-bound).
    x1 = x1.astype(jnp.bfloat16)
    x2 = x2.astype(jnp.bfloat16)

    def prep(w):  # (C, C) f32, zero-padded to (Cp, Cp)
        w = w.astype(jnp.float32)
        if Cp != C:
            w = jnp.pad(w, ((0, Cp - C), (0, Cp - C)))
        return w

    w1t = prep(params["w1"]).T     # pre-transposed for the in-kernel layouts
    w2t = prep(params["w2"]).T
    w3 = prep(params["w3"])

    kernel = functools.partial(_cam_kernel, inv_hw=1.0 / float(HW))
    out = pl.pallas_call(
        kernel,
        out_shape=jax.ShapeDtypeStruct((N, Cp, HWp), jnp.float32),
        grid=(N,),
        in_specs=[
            pl.BlockSpec((1, Cp, HWp), lambda n: (n, 0, 0)),   # x1[n]
            pl.BlockSpec((1, Cp, HWp), lambda n: (n, 0, 0)),   # x2[n]
            pl.BlockSpec((Cp, Cp), lambda n: (0, 0)),          # conv1 weight^T
            pl.BlockSpec((Cp, Cp), lambda n: (0, 0)),          # conv2 weight^T
            pl.BlockSpec((Cp, Cp), lambda n: (0, 0)),          # conv3 weight
        ],
        out_specs=pl.BlockSpec((1, Cp, HWp), lambda n: (n, 0, 0)),
        compiler_params=pltpu.CompilerParams(
            dimension_semantics=("parallel",),
            vmem_limit_bytes=_pick_vmem_limit_bytes(),
        ),
    )(x1, x2, w1t, w2t, w3)

    out = out[:, :C, :HW]
    return out.reshape(N, C, H, W)


def init_channel_attention_params(key, in_channels, out_channels):
    """Deterministic synthetic 1x1-conv weights, stored as (Cout, Cin)."""
    # The module's own forward only typechecks when in == out channels
    # (conv2 runs on conv1's output, conv3 runs on an `inchannels` tensor).
    assert in_channels == out_channels
    c = in_channels
    bound = 1.0 / jnp.sqrt(jnp.float32(c))
    k1, k2, k3 = jax.random.split(key, 3)
    w1 = jax.random.uniform(k1, (c, c), jnp.float32, -bound, bound)
    w2 = jax.random.uniform(k2, (c, c), jnp.float32, -bound, bound)
    w3 = jax.random.uniform(k3, (c, c), jnp.float32, -bound, bound)
    return dict(w1=w1, w2=w2, w3=w3)


# ----------------------- pure-JAX reference (for checking) -----------------------
def _ref_forward(x1, x2, params):
    x = x1 + x2
    avg = jnp.mean(x, axis=(2, 3), keepdims=True)                       # (N,C,1,1)
    a = jnp.maximum(jnp.einsum("oc,nchw->nohw", params["w1"], avg), 0.0)
    gate = jax.nn.sigmoid(jnp.einsum("oc,nchw->nohw", params["w2"], a))
    b4 = x + gate * x
    return jnp.einsum("oc,nchw->nohw", params["w3"], b4)


if __name__ == "__main__":
    key = jax.random.PRNGKey(0)
    kx1, kx2, kp = jax.random.split(key, 3)

    N, C, H, W = 2, 4, 16, 16
    x1 = jax.random.normal(kx1, (N, C, H, W), jnp.float32)
    x2 = jax.random.normal(kx2, (N, C, H, W), jnp.float32)
    params = init_channel_attention_params(kp, C, C)

    out = jax.block_until_ready(channel_attention_forward(x1, x2, params))

    # Reference on the same bf16-quantized activations the kernel ingests, so
    # the tolerance only has to absorb the bf16 MXU feed + approx sigmoid
    # (review: loosen tolerance when adopting bf16 I/O).
    x1_q = x1.astype(jnp.bfloat16).astype(jnp.float32)
    x2_q = x2.astype(jnp.bfloat16).astype(jnp.float32)
    ref = jax.block_until_ready(_ref_forward(x1_q, x2_q, params))

    assert out.shape == (N, C, H, W), out.shape
    max_err = float(jnp.max(jnp.abs(out - ref)))
    assert jnp.allclose(out, ref, atol=5e-2, rtol=5e-2), max_err
    print("KERNEL_OK")
</pallas_src>

<mosaic_0001>
module attributes {stable_mosaic.version = 11 : i64} {
  func.func @_cam_kernel(%arg0: i32, %arg1: memref<1x16x256xbf16, #tpu.memory_space<vmem>>, %arg2: memref<1x16x256xbf16, #tpu.memory_space<vmem>>, %arg3: memref<16x16xf32, #tpu.memory_space<vmem>>, %arg4: memref<16x16xf32, #tpu.memory_space<vmem>>, %arg5: memref<16x16xf32, #tpu.memory_space<vmem>>, %arg6: memref<1x16x256xf32, #tpu.memory_space<vmem>>) attributes {dimension_semantics = [#tpu.dimension_semantics<parallel>], iteration_bounds = array<i64: 2>, scalar_prefetch = 0 : i64, scratch_operands = 0 : i64, tpu.core_type = #tpu.core_type<tc>, window_params = [{transform_indices = @transform_0, window_bounds = array<i64: 1, 16, 256>}, {transform_indices = @transform_1, window_bounds = array<i64: 1, 16, 256>}, {pipeline_mode = #tpu.pipeline_mode<synchronous>, transform_indices = @transform_2, window_bounds = array<i64: 16, 16>}, {pipeline_mode = #tpu.pipeline_mode<synchronous>, transform_indices = @transform_3, window_bounds = array<i64: 16, 16>}, {pipeline_mode = #tpu.pipeline_mode<synchronous>, transform_indices = @transform_4, window_bounds = array<i64: 16, 16>}, {transform_indices = @transform_5, window_bounds = array<i64: 1, 16, 256>}]} {
    %c0 = arith.constant 0 : index
    %c0_0 = arith.constant 0 : index
    %c0_1 = arith.constant 0 : index
    %0 = vector.load %arg1[%c0, %c0_0, %c0_1] : memref<1x16x256xbf16, #tpu.memory_space<vmem>>, vector<1x16x256xbf16>
    %1 = vector.shape_cast %0 : vector<1x16x256xbf16> to vector<16x256xbf16>
    %2 = arith.extf %1 : vector<16x256xbf16> to vector<16x256xf32>
    %c0_2 = arith.constant 0 : index
    %c0_3 = arith.constant 0 : index
    %c0_4 = arith.constant 0 : index
    %3 = vector.load %arg2[%c0_2, %c0_3, %c0_4] : memref<1x16x256xbf16, #tpu.memory_space<vmem>>, vector<1x16x256xbf16>
    %4 = vector.shape_cast %3 : vector<1x16x256xbf16> to vector<16x256xbf16>
    %5 = arith.extf %4 : vector<16x256xbf16> to vector<16x256xf32>
    %6 = arith.addf %2, %5 : vector<16x256xf32>
    %cst = arith.constant dense<0.000000e+00> : vector<16xf32>
    %7 = vector.multi_reduction <add>, %6, %cst [1] : vector<16x256xf32> to vector<16xf32>
    %8 = vector.shape_cast %7 : vector<16xf32> to vector<16x1xf32>
    %cst_5 = arith.constant 3.906250e-03 : f32
    %9 = vector.broadcast %cst_5 : f32 to vector<16x1xf32>
    %10 = arith.mulf %8, %9 : vector<16x1xf32>
    %c0_6 = arith.constant 0 : index
    %c0_7 = arith.constant 0 : index
    %11 = vector.load %arg3[%c0_6, %c0_7] : memref<16x16xf32, #tpu.memory_space<vmem>>, vector<16x16xf32>
    %12 = vector.broadcast %10 : vector<16x1xf32> to vector<16x16xf32>
    %13 = arith.mulf %11, %12 : vector<16x16xf32>
    %cst_8 = arith.constant dense<0.000000e+00> : vector<16xf32>
    %14 = vector.multi_reduction <add>, %13, %cst_8 [0] : vector<16x16xf32> to vector<16xf32>
    %15 = vector.shape_cast %14 : vector<16xf32> to vector<1x16xf32>
    %cst_9 = arith.constant 0.000000e+00 : f32
    %16 = vector.broadcast %cst_9 : f32 to vector<1x16xf32>
    %17 = arith.maximumf %15, %16 : vector<1x16xf32>
    %c0_10 = arith.constant 0 : index
    %c0_11 = arith.constant 0 : index
    %18 = vector.load %arg4[%c0_10, %c0_11] : memref<16x16xf32, #tpu.memory_space<vmem>>, vector<16x16xf32>
    %cst_12 = arith.constant dense<0.000000e+00> : vector<1x16xf32>
    %19 = tpu.matmul %17, %18, %cst_12 {dimension_numbers = #tpu.dot_dimension_numbers<[1], [0], [0], [1], [0, 0, 1, 1], [], []>} : vector<1x16xf32>, vector<16x16xf32>, vector<1x16xf32> -> vector<1x16xf32>
    %cst_13 = arith.constant 0.000000e+00 : f32
    %20 = vector.broadcast %cst_13 : f32 to vector<1x16xf32>
    %21 = arith.subf %20, %19 : vector<1x16xf32>
    %22 = math.exp %21 : vector<1x16xf32>
    %cst_14 = arith.constant 1.000000e+00 : f32
    %23 = vector.broadcast %cst_14 : f32 to vector<1x16xf32>
    %24 = arith.addf %23, %22 : vector<1x16xf32>
    %25 = tpu.reciprocal %24 {approx = true} : vector<1x16xf32> -> vector<1x16xf32>
    %c0_15 = arith.constant 0 : index
    %c0_16 = arith.constant 0 : index
    %26 = vector.load %arg5[%c0_15, %c0_16] : memref<16x16xf32, #tpu.memory_space<vmem>>, vector<16x16xf32>
    %cst_17 = arith.constant 1.000000e+00 : f32
    %27 = vector.broadcast %cst_17 : f32 to vector<1x16xf32>
    %28 = arith.addf %27, %25 : vector<1x16xf32>
    %29 = vector.broadcast %28 : vector<1x16xf32> to vector<16x16xf32>
    %30 = arith.mulf %26, %29 : vector<16x16xf32>
    %31 = arith.truncf %30 : vector<16x16xf32> to vector<16x16xbf16>
    %32 = arith.truncf %6 : vector<16x256xf32> to vector<16x256xbf16>
    %cst_18 = arith.constant dense<0.000000e+00> : vector<16x256xf32>
    %33 = tpu.matmul %31, %32, %cst_18 {dimension_numbers = #tpu.dot_dimension_numbers<[1], [0], [0], [1], [0, 0, 1, 1], [], []>} : vector<16x16xbf16>, vector<16x256xbf16>, vector<16x256xf32> -> vector<16x256xf32>
    %c0_19 = arith.constant 0 : index
    %c0_20 = arith.constant 0 : index
    %c0_21 = arith.constant 0 : index
    %34 = vector.load %arg6[%c0_19, %c0_20, %c0_21] : memref<1x16x256xf32, #tpu.memory_space<vmem>>, vector<1x16x256xf32>
    %35 = vector.shape_cast %34 : vector<1x16x256xf32> to vector<16x256xf32>
    %36 = vector.shape_cast %33 : vector<16x256xf32> to vector<1x16x256xf32>
    tpu.vector_store %arg6[%c0_19, %c0_20, %c0_21], %36 {strides = array<i32>} : memref<1x16x256xf32, #tpu.memory_space<vmem>>, vector<1x16x256xf32>,
    return
  }
  func.func @transform_0(%arg0: i32) -> (i32, i32, i32) {
    %c0_i32 = arith.constant 0 : i32
    %c0_i32_0 = arith.constant 0 : i32
    %c0_i32_1 = arith.constant 0 : i32
    return %arg0, %c0_i32, %c0_i32_0 : i32, i32, i32
  }
  func.func @transform_1(%arg0: i32) -> (i32, i32, i32) {
    %c0_i32 = arith.constant 0 : i32
    %c0_i32_0 = arith.constant 0 : i32
    %c0_i32_1 = arith.constant 0 : i32
    return %arg0, %c0_i32, %c0_i32_0 : i32, i32, i32
  }
  func.func @transform_2(%arg0: i32) -> (i32, i32) {
    %c0_i32 = arith.constant 0 : i32
    %c0_i32_0 = arith.constant 0 : i32
    %c0_i32_1 = arith.constant 0 : i32
    return %c0_i32, %c0_i32_0 : i32, i32
  }
  func.func @transform_3(%arg0: i32) -> (i32, i32) {
    %c0_i32 = arith.constant 0 : i32
    %c0_i32_0 = arith.constant 0 : i32
    %c0_i32_1 = arith.constant 0 : i32
    return %c0_i32, %c0_i32_0 : i32, i32
  }
  func.func @transform_4(%arg0: i32) -> (i32, i32) {
    %c0_i32 = arith.constant 0 : i32
    %c0_i32_0 = arith.constant 0 : i32
    %c0_i32_1 = arith.constant 0 : i32
    return %c0_i32, %c0_i32_0 : i32, i32
  }
  func.func @transform_5(%arg0: i32) -> (i32, i32, i32) {
    %c0_i32 = arith.constant 0 : i32
    %c0_i32_0 = arith.constant 0 : i32
    %c0_i32_1 = arith.constant 0 : i32
    return %arg0, %c0_i32, %c0_i32_0 : i32, i32, i32
  }
}

</mosaic_0001>

<bundles_post_ra>
// kernel: tpu_custom_call.1
= control target key start
LH: loop header
LB: loop body
LE: loop exit
PB: predicated region body
PF: predicated region fallthrough
CT: control target
= control target key end

     0   :  { %s1298_s0 = inlined_call_operand.hbm [shape: bf16[2,16,256], index: 0, kind: input, shape index: {}]   ;;  %s1299_s1 = inlined_call_operand.hbm [shape: bf16[2,16,256], index: 1, kind: input, shape index: {}]   ;;  %s1300_s2 = inlined_call_operand.hbm [shape: f32[16,16], index: 2, kind: input, shape index: {}]   ;;  %s1301_s3 = inlined_call_operand.hbm [shape: f32[16,16], index: 3, kind: input, shape index: {}]   ;;  %s1302_s4 = inlined_call_operand.hbm [shape: f32[16,16], index: 4, kind: input, shape index: {}]   ;;  %s1303_s5 = inlined_call_operand.hbm [shape: f32[2,16,256], index: 5, kind: output, shape index: {}]  }
   0x1   :  { %1311 = sst [smem:[#allocation17_spill]] %s1298_s0 }
   0x2   :  { %1312 = sst [smem:[#allocation18_spill]] %s1300_s2 }
   0x3   :  { %1313 = sst [smem:[#allocation19_spill]] %s1301_s3 }
   0x4   :  { %1314 = sst [smem:[#allocation20_spill]] %s1302_s4 }
   0x5   :  { %10 = vsyncpa [#allocation3], 0 }
   0x6   :  { %12 = vsyncpa [#allocation3 + $0x1], 0 }
   0x7   :  { %13 = vsyncpa [#allocation6], 0 }
   0x8   :  { %15 = vsyncpa [#allocation6 + $0x1], 0 }
   0x9   :  { %16 = vsyncpa [#allocation9], 0 }
   0xa   :  { %17 = vsyncpa [#allocation4], 0 }
   0xb   :  { %19 = vsyncpa [#allocation4 + $0x1], 0  ;;  %s1033_s18 = smov 0   ;;  %s1035_s19 = smov 0  }
   0xc   :  { %s1037_s20 = smov 0   ;;  %s1039_s21 = smov 0  }
   0xd LB: > { %s1054_s22 = sadd.s32 4294967295, %s988_s21   ;;  %s646_s23 = sadd.s32 4294967294, %s988_s21   ;;  %s988_s21 = sphi %s1039_s21, %s1338_s21   ;;  %s984_s20 = sphi %s1037_s20, %s1337_s20   ;;  %s980_s19 = sphi %s1035_s19, %s1336_s19   ;;  %s976_s18 = sphi %s1033_s18, %s1335_s18  }
   0xe   : > { %p45_p0 = scmp.ne.s32.totalorder %s980_s19, %s976_s18  ;;  %p1304_p1 = scmp.eq.s32.totalorder %s1054_s22, 0 }
   0xf   : > { %p158_p2 = scmp.eq.s32.totalorder %s1054_s22, 1  ;;  %p164_p3 = scmp.eq.s32.totalorder %s646_s23, 1 }
  0x10   : > { %p1063_p4 = por %p1304_p1, %p45_p0  ;;  %p647_p5 = scmp.ge.s32.totalorder %s988_s21, 1 }
  0x11   : > { %p1068_p6 = por %p164_p3, %p45_p0  ;;  %p171_p7 = scmp.lt.s32.totalorder %s988_s21, 3 }
  0x12   : > { %s1315_s24 = scalar_select %p1063_p4, 1, 0 }
  0x13   : > { %s1316_s25 = scalar_select %p1068_p6, 1, 0 }
  0x14   : > { %p1073_p8 = pnand %p647_p5, %p171_p7  ;;  %s990_s27 = smov [#allocation7]  }
  0x15   : > { %s183_s28 = sshll.u32 %s990_s27, 4  ;;  %s991_s30 = smov [#allocation8]   ;;  %s184_s28 = int_to_ptr.vmem [resolvable:$true] %s183_s28 }
  0x16   : > { %p703_p9 = pneg %p1073_p8  ;;  %s196_s6 = sshll.u32 %s991_s30, 4  ;;  %s197_s6 = int_to_ptr.vmem [resolvable:$true] %s196_s6 }
  0x17   : > { %s992_s7 = smov [#allocation10]   ;;  %s789_s9 = scalar_lea.vmem %s184_s28, 256 }
  0x18   : > { %p1082_p11 = pnand %p703_p9, %p1304_p1  ;;  %s209_s8 = sshll.u32 %s992_s7, 4  ;;  %s210_s8 = int_to_ptr.vmem [resolvable:$true] %s209_s8 }
  0x19   : > { %p790_p13 = scmp.ne.s32.totalorder %s184_s28, %s789_s9  ;;  %p797_p5 = scmp.lt.s32.totalorder %s184_s28, %s184_s28 }
  0x1a   : > { %p780_p12 = pneg %p1082_p11  ;;  %p798_p7 = scmp.lt.s32.totalorder %s789_s9, %s789_s9 }
  0x1c   : > { %p792_p0 = pnand %p790_p13, %p780_p12  ;;  %p799_p9 = por %p798_p7, %p797_p5 }
  0x1e   : > { %p793_p3 = pneg %p792_p0 }
  0x20   : > { %p800_p10 = pnand %p799_p9, %p793_p3 }
  0x22   : > { %803 = shalt.err (!%p800_p10)
}
  0x23   : > { %s1305_s10 = smov 128   ;;  %s1307_s11 = smov 8  }
  0x24   : > { %s1319_s2 = sld [smem:[#allocation18_spill]]  ;;  %s815_s14 = scalar_lea.vmem %s197_s6, 256 }
  0x25   : > { %p816_p13 = scmp.ne.s32.totalorder %s197_s6, %s815_s14  ;;  %p823_p3 = scmp.lt.s32.totalorder %s197_s6, %s197_s6 }
  0x26   : > { %p824_p10 = scmp.lt.s32.totalorder %s815_s14, %s815_s14 }
  0x27   : > { %p818_p0 = pnand %p816_p13, %p780_p12 }
  0x28   : > { %p825_p7 = por %p824_p10, %p823_p3 }
  0x29   : > { %p819_p5 = pneg %p818_p0 }
  0x2a   : > { %706 = dma.hbm_to_vmem [thread:$0]  (!%p1082_p11), %s1319_s2, 256, %s184_s28, [#allocation6], %s1305_s10, %s1305_s10, %s1307_s11  }
  0x2b   : > { %p826_p9 = pnand %p825_p7, %p819_p5 }
  0x2d   : > { %829 = shalt.err (!%p826_p9)
}
  0x2e   : > { %s1320_s3 = sld [smem:[#allocation19_spill]]  ;;  %s841_s17 = scalar_lea.vmem %s210_s8, 256 }
  0x2f   : > { %p842_p1 = scmp.ne.s32.totalorder %s210_s8, %s841_s17  ;;  %p849_p3 = scmp.lt.s32.totalorder %s210_s8, %s210_s8 }
  0x30   : > { %p850_p5 = scmp.lt.s32.totalorder %s841_s17, %s841_s17 }
  0x31   : > { %p844_p13 = pnand %p842_p1, %p780_p12 }
  0x32   : > { %p851_p10 = por %p850_p5, %p849_p3 }
  0x33   : > { %p845_p0 = pneg %p844_p13 }
  0x34   : > { %709 = dma.hbm_to_vmem [thread:$0]  (!%p1082_p11), %s1320_s3, 256, %s197_s6, [#allocation9], %s1305_s10, %s1305_s10, %s1307_s11  }
  0x35   : > { %p852_p7 = pnand %p851_p10, %p845_p0 }
  0x37   : > { %855 = shalt.err (!%p852_p7)
}
  0x38   : > { %s1321_s4 = sld [smem:[#allocation20_spill]]  ;;  %s1122_s28 = sadd.s32 1, %s988_s21  }
  0x39   : > { %s29_s29 = ssub.s32 %s988_s21, %s1122_s28  ;;  %s32_s30 = sadd.s32 1, %s984_s20 }
  0x3a   : > { %p30_p1 = scmp.eq.s32.totalorder %s29_s29, 0  ;;  %p39_p12 = scmp.ne.s32.totalorder %s984_s20, %s980_s19 }
  0x3b   : > { %p40_p9 = scmp.eq.s32.totalorder %s988_s21, 0  ;;  %p727_p13 = scmp.lt.s32.totalorder %s988_s21, 2 }
  0x3c   : > { %s1132_s6 = scalar_select %p30_p1, %s984_s20, %s32_s30  }
  0x3d   : > { %p41_p0 = por %p40_p9, %p39_p12  ;;  %p1136_p3 = por %p158_p2, %p39_p12 }
  0x3e   : > { %712 = dma.hbm_to_vmem [thread:$0]  (!%p1082_p11), %s1321_s4, 256, %s210_s8, [#allocation9], %s1305_s10, %s1305_s10, %s1307_s11  }
  0x3f   : > { %s1322_s7 = scalar_select %p1136_p3, 1, 0 }
  0x40   : > { %s223_s9 = sand.u32 1, %s984_s20   ;;  %s672_s12 = sshll.u32 %s988_s21, 8 }
  0x41   : > { %s1142_s8 = sshll.u32 %s223_s9, 4  ;;  %s1323_s0 = sld [smem:[#allocation17_spill]] }
  0x42   : > { %s227_s16 = scalar_lea.vmem [#allocation2], %s1142_s8  ;;  %p1150_p11 = pnand %p727_p13, %p41_p0 }
  0x43   : > { %s234_s17 = sshll.u32 %s227_s16, 4  ;;  %s1159_s30 = scalar_lea.hbm %s1299_s1, %s672_s12  ;;  %s1154_s17 = int_to_ptr.vmem [resolvable:$true] %s234_s17 }
  0x44   : > { %s1161_s13 = scalar_lea.sflag [#allocation3], %s223_s9  ;;  %p858_p5 = pneg %p1150_p11 }
  0x47   : > { %s1147_s15 = scalar_lea.hbm %s1323_s0, %s672_s12  ;;  %s861_s11 = scalar_lea.hbm %s1323_s0, 512 }
  0x48   : > { %s856_s14 = scalar_lea.hbm %s1147_s15, 256  ;;  %p862_p1 = scmp.lt.s32.totalorder %s1147_s15, %s1323_s0 }
  0x49   : > { %p857_p2 = scmp.ne.s32.totalorder %s1147_s15, %s856_s14  ;;  %p863_p12 = scmp.lt.s32.totalorder %s861_s11, %s856_s14 }
  0x4b   : > { %p859_p10 = pnand %p858_p5, %p857_p2  ;;  %p864_p9 = por %p863_p12, %p862_p1 }
  0x4d   : > { %p860_p7 = pneg %p859_p10 }
  0x4f   : > { %p865_p13 = pnand %p864_p9, %p860_p7 }
  0x51   : > { %868 = shalt.err (!%p865_p13)
}
  0x52   : > { %s869_s9 = scalar_lea.vmem %s1154_s17, 256  ;;  %s995_s10 = smov [#allocation2]  }
  0x53   : > { %p870_p0 = scmp.ne.s32.totalorder %s1154_s17, %s869_s9  ;;  %s874_s12 = sshll.u32 %s995_s10, 4  ;;  %s875_s12 = int_to_ptr.vmem [resolvable:$false] %s874_s12 }
  0x54   : > { %s876_s27 = scalar_lea.vmem %s875_s12, 512  ;;  %p877_p6 = scmp.lt.s32.totalorder %s1154_s17, %s875_s12 }
  0x55   : > { %p872_p2 = pnand %p870_p0, %p858_p5  ;;  %p878_p3 = scmp.lt.s32.totalorder %s876_s27, %s869_s9 }
  0x57   : > { %p873_p10 = pneg %p872_p2  ;;  %p879_p4 = por %p878_p3, %p877_p6 }
  0x59   : > { %p880_p1 = pnand %p879_p4, %p873_p10 }
  0x5b   : > { %883 = shalt.err (!%p880_p1)
}
  0x5c   : > { %s1325_s2 = smov 8   ;;  %s1326_s3 = smov 128  }
  0x5d   : > { %716 = dma.hbm_to_vmem [thread:$0]  (!%p1150_p11), %s1147_s15, 256, %s1154_s17, %s1161_s13, %s1326_s3, %s1326_s3, %s1325_s2  }
  0x5e   : > { %s248_s11 = scalar_lea.vmem [#allocation5], %s1142_s8  ;;  %s244_s14 = sand.u32 1, %s988_s21  }
  0x5f   : > { %s255_s29 = sshll.u32 %s248_s11, 4  ;;  %s245_s16 = scalar_lea.sflag [#allocation6], %s244_s14  ;;  %s1193_s29 = int_to_ptr.vmem [resolvable:$true] %s255_s29 }
  0x60   : > { %s884_s9 = scalar_lea.hbm %s1159_s30, 256  ;;  %s889_s27 = scalar_lea.hbm %s1299_s1, 512 }
  0x61   : > { %p885_p4 = scmp.ne.s32.totalorder %s1159_s30, %s884_s9  ;;  %p890_p7 = scmp.lt.s32.totalorder %s1159_s30, %s1299_s1 }
  0x62   : > { %p891_p12 = scmp.lt.s32.totalorder %s889_s27, %s884_s9 }
  0x63   : > { %p887_p6 = pnand %p885_p4, %p858_p5 }
  0x64   : > { %p892_p9 = por %p891_p12, %p890_p7 }
  0x65   : > { %p888_p3 = pneg %p887_p6 }
  0x67   : > { %p893_p13 = pnand %p892_p9, %p888_p3 }
  0x69   : > { %896 = shalt.err (!%p893_p13)
}
  0x6a   : > { %s897_s8 = scalar_lea.vmem %s1193_s29, 256  ;;  %s996_s15 = smov [#allocation5]  }
  0x6b   : > { %p898_p0 = scmp.ne.s32.totalorder %s1193_s29, %s897_s8  ;;  %s902_s17 = sshll.u32 %s996_s15, 4  ;;  %s903_s17 = int_to_ptr.vmem [resolvable:$false] %s902_s17 }
  0x6c   : > { %s904_s13 = scalar_lea.vmem %s903_s17, 512  ;;  %p905_p1 = scmp.lt.s32.totalorder %s1193_s29, %s903_s17 }
  0x6d   : > { %p900_p2 = pnand %p898_p0, %p858_p5  ;;  %p906_p4 = scmp.lt.s32.totalorder %s904_s13, %s897_s8 }
  0x6f   : > { %p901_p10 = pneg %p900_p2  ;;  %p907_p6 = por %p906_p4, %p905_p1 }
  0x71   : > { %p908_p7 = pnand %p907_p6, %p901_p10 }
  0x73   : > { %911 = shalt.err (!%p908_p7)
}
  0x74   : > { %719 = dma.hbm_to_vmem [thread:$0]  (!%p1150_p11), %s1159_s30, 256, %s1193_s29, %s245_s16, %s1326_s3, %s1326_s3, %s1325_s2  }
  0x75   : > { %267 = sbr.rel (%p1073_p8) target bundleno = 751 (0x2ef), region = 40  ;;  %s1223_s0 = sand.u32 (!%p1073_p8), 1, %s980_s19  }
  0x76   : > { %s659_s4 = sshll.u32 (!%p1073_p8), %s1223_s0, 4  ;;  %s270_s11 = scalar_lea.sflag (!%p1073_p8), [#allocation3], %s1223_s0 }
  0x77   : > { %s273_s14 = scalar_lea.vmem (!%p1073_p8), [#allocation2], %s659_s4  ;;  %p1327_p5 = scmp.ne.s32.totalorder (!%p1073_p8), %s1315_s24, 0 }
  0x7a   : > { %955 = dma.done.wait (%p1327_p5), %s270_s11, 256  }
  0x7b   : > { %957 = vsyncadd (%p1327_p5), %s270_s11, 4294967040  ;;  %s278_s23 = sand.u32 1, %s1054_s22   ;;  %s282_s26 = scalar_lea.vmem [#allocation5], %s659_s4 }
  0x7c   : > { %s279_s30 = scalar_lea.sflag [#allocation6], %s278_s23 }
  0x7d   : > { %959 = dma.done.wait (%p1327_p5), %s279_s30, 256  }
  0x7e   : > { %961 = vsyncadd (%p1327_p5), %s279_s30, 4294967040  ;;  %p1328_p8 = scmp.eq.s32.totalorder %s1054_s22, 0 }
  0x80   : > { %963 = dma.done.wait (%p1328_p8), [#allocation6], 256   ;;  %p1329_p11 = pmov %p1328_p8 }
  0x81   : > { %p1330_p3 = pmov %p1328_p8 }
  0x82   : > { %965 = vsyncadd (%p1329_p11), [#allocation6], 4294967040 }
  0x83   : > { %967 = dma.done.wait (%p1330_p3), [#allocation9], 512   ;;  %p1331_p12 = pmov %p1330_p3 }
  0x84   : > { %v327_v0 = vld [vmem:[%s273_s14] sm:$0xff]  ;;  %v328_v2 = vld [vmem:[%s273_s14 + $0x8] sm:$0xff]  ;;  %v997_v19 = vmov 0.0   ;;  %vm998_vm0 = vmmov 0   ;;  %vm355_vm1 = vcmask 130048   ;;  %v999_v41 = vmov 0  }
  0x85   : > { %969 = vsyncadd (%p1331_p12), [#allocation9], 4294966784  ;;  %v333_v1 = vld [vmem:[%s282_s26] sm:$0xff]  ;;  %v329_v3 = vunpack.c.l.bf16 %v327_v0  ;;  %v330_v4 = vunpack.c.h.bf16 %v327_v0  ;;  %v334_v7 = vld [vmem:[%s282_s26 + $0x8] sm:$0xff]  ;;  %v331_v8 = vunpack.c.l.bf16 %v328_v2  ;;  %v332_v9 = vunpack.c.h.bf16 %v328_v2  ;;  %678 = vmatprep.subr.mxu0 %v997_v19  ;;  %682 = vmatprep.mubr.msk.f32.mxu0 %vm998_vm0, %v997_v19  ;;  %s664_s24 = sshll.u32 %s1223_s0, 5  ;;  %s674_s29 = sshll.u32 %s1054_s22, 9 }
  0x86   : > { %v335_v5 = vunpack.c.l.bf16 %v333_v1  ;;  %v336_v6 = vunpack.c.h.bf16 %v333_v1  ;;  %v337_v10 = vunpack.c.l.bf16 %v334_v7  ;;  %v338_v11 = vunpack.c.h.bf16 %v334_v7  ;;  %v367_v18 = vld [vmem:[#allocation8 + $0x8] sm:$0xff]  ;;  %v366_v20 = vld [vmem:[#allocation8] sm:$0xff]  ;;  %v351_v23 = vld [vmem:[#allocation7] sm:$0xff]  ;;  %493 = vmatprep.mubr.bf16.mxu1 %v999_v41  ;;  %s325_s2 = scalar_lea.vmem [#allocation11], %s664_s24  ;;  %s1255_s10 = scalar_lea.hbm %s1303_s5, %s674_s29 }
  0x87   : > { %679 = vmatpush3.msra.mxu0 %v367_v18  ;;  %v352_v24 = vld [vmem:[#allocation7 + $0x8] sm:$0xff]  ;;  %v449_v48 = vlaneseq  ;;  %v446_v53 = vld [vmem:[#allocation10] sm:$0xff]  ;;  %s522_s3 = sshll.u32 %s325_s2, 4  ;;  %s509_s12 = scalar_lea.sflag [#allocation4], %s1223_s0  ;;  %s1250_s3 = int_to_ptr.vmem [resolvable:$true] %s522_s3 }
  0x88   : > { %v339_v12 = vadd.f32 %v335_v5, %v329_v3  ;;  %v340_v13 = vadd.f32 %v336_v6, %v330_v4  ;;  %v341_v14 = vadd.f32 %v337_v10, %v331_v8  ;;  %v342_v15 = vadd.f32 %v338_v11, %v332_v9  ;;  %680 = vmatprep.subr.mxu0 %v997_v19  ;;  %v447_v54 = vld [vmem:[#allocation10 + $0x8] sm:$0xff]  ;;  %s912_s27 = scalar_lea.vmem %s1250_s3, 512  ;;  %p1332_p13 = scmp.ne.s32.totalorder %s1322_s7, 0 }
  0x89   : > { %681 = vmatpush3.msra.mxu0 %v366_v20  ;;  %v450_v49 = vshrl.u32 %v449_v48, 7  ;;  %p913_p9 = scmp.ne.s32.totalorder %s1250_s3, %s912_s27  ;;  %s1000_s22 = smov [#allocation11]  }
  0x8a   : > { %v343_v16 = vadd.f32 %v340_v13, %v339_v12  ;;  %v346_v17 = vadd.f32 %v342_v15, %v341_v14  ;;  %v457_v39 = vpack.c.bf16 %v342_v15, %v340_v13  ;;  %v456_v40 = vpack.c.bf16 %v341_v14, %v339_v12  ;;  %s916_s8 = sshll.u32 %s1000_s22, 4  ;;  %s917_s8 = int_to_ptr.vmem [resolvable:$false] %s916_s8 }
  0x8b   : > { %v451_v50 = vsub.s32 0, %v450_v49  ;;  %p914_p0 = pnand %p913_p9, %p1332_p13  ;;  %s918_s15 = scalar_lea.vmem %s917_s8, 1024 }
  0x8c   : > { %344 = vadd.xlane.f32.xlu0 %v343_v16  ;;  %475 = vmatprep.subr.bf16.mxu1 %v457_v39  ;;  %p919_p10 = scmp.lt.s32.totalorder %s1250_s3, %s917_s8  ;;  %p920_p1 = scmp.lt.s32.totalorder %s918_s15, %s912_s27 }
  0x8d   : > { %476 = vmatpush1.bf16.msra.mxu1 %v456_v40  ;;  %p915_p2 = pneg %p914_p0 }
  0x8e   : > { %p921_p4 = por %p920_p1, %p919_p10 }
  0x90   : > { %347 = vadd.xlane.f32.xlu0 %v346_v17  ;;  %p922_p6 = pnand %p921_p4, %p915_p2 }
 0x115   : > { %v345_v21 = vpop.xlane.xlu0 %344 }
 0x116   : > { %v349_v22 = vmul.f32 0.00390625, %v345_v21 }
 0x118   : > { %v353_v26 = vmul.f32 %v351_v23, %v349_v22 }
 0x119   : > { %v348_v25 = vpop.xlane.xlu0 %347 }
 0x11a   : > { %v350_v27 = vmul.f32 0.00390625, %v348_v25  ;;  %v356_v29 = vsel %vm355_vm1, %v353_v26, 0.0 }
 0x11c   : > { %v354_v28 = vmul.f32 %v352_v24, %v350_v27 }
 0x11e   : > { %v357_v30 = vsel %vm355_vm1, %v354_v28, 0.0 }
 0x11f   : > { %v358_v31 = vadd.f32 %v357_v30, %v356_v29 }
 0x121   : > { %v359_v32 = vrot.slane %v358_v31, 4 }
 0x123   : > { %v360_v33 = vadd.f32 %v359_v32, %v358_v31 }
 0x125   : > { %v361_v34 = vrot.slane %v360_v33, 2 }
 0x127   : > { %v362_v35 = vadd.f32 %v361_v34, %v360_v33 }
 0x129   : > { %v363_v36 = vrot.slane %v362_v35, 1 }
 0x12b   : > { %v364_v37 = vadd.f32 %v363_v36, %v362_v35 }
 0x12d   : > { %v365_v38 = vmax.f32 %v364_v37, 0.0 }
 0x12f   : > { %683 = vmatmul.mubr.msk.f32.vlgmr.msra.gmra.mxu0 %vm355_vm1, %v365_v38 }
 0x1ef   : > { %v437_v42 = vpop.f32.mrf.mxu0 }
 0x1f0   : > { %v441_v43 = vsub.f32 0.0, %v437_v42 }
 0x1f1   : > { %v684_v44 = vpop.f32.mrf.mxu0 }
 0x1f2   : > { %v442_v45 = vmul.f32 1.442695, %v441_v43 }
 0x1f4   : > { %774 = vpow2.f32 %v442_v45 }
 0x201   : > { %v775_v46 = vpop.eup %774 }
 0x202   : > { %v444_v47 = vadd.f32 1.0, %v775_v46 }
 0x204   : > { %776 = vrcp.f32 %v444_v47 }
 0x211   : > { %v777_v51 = vpop.eup %776 }
 0x212   : > { %v448_v52 = vadd.f32 1.0, %v777_v51 }
 0x214   : > { %v452_v55 = vrot.slane %v448_v52, %v451_v50 }
 0x216   : > { %v453_v56 = vmul.f32 %v452_v55, %v446_v53  ;;  %v454_v57 = vmul.f32 %v452_v55, %v447_v54 }
 0x218   : > { %v455_v58 = vpack.c.bf16 %v454_v57, %v453_v56 }
 0x21a   : > { %666 = vmatmul.mubr.msk.bf16.vlgmr.msra.gmra.mxu1 %vm355_vm1, %v455_v58 }
 0x2da   : > { %v495_v59 = vpop.f32.mrf.mxu1 }
 0x2db   : > { %504 = vst [vmem:[%s325_s2] sm:$0xff] %v495_v59 }
 0x2dc   : > { %v497_v60 = vpop.f32.mrf.mxu1 }
 0x2dd   : > { %505 = vst [vmem:[%s325_s2 + $0x8] sm:$0xff] %v497_v60 }
 0x2de   : > { %v499_v61 = vpop.f32.mrf.mxu1 }
 0x2df   : > { %506 = vst [vmem:[%s325_s2 + $0x10] sm:$0xff] %v499_v61 }
 0x2e0   : > { %v501_v62 = vpop.f32.mrf.mxu1 }
 0x2e1   : > { %507 = vst [vmem:[%s325_s2 + $0x18] sm:$0xff] %v501_v62 }
 0x2e2   : > { %925 = shalt.err (!%p922_p6)
}
 0x2e3   : > { %s926_s17 = scalar_lea.hbm %s1255_s10, 512  ;;  %s930_s11 = scalar_lea.hbm %s1303_s5, 1024 }
 0x2e4   : > { %p927_p7 = scmp.ne.s32.totalorder %s1255_s10, %s926_s17  ;;  %p931_p11 = scmp.lt.s32.totalorder %s1255_s10, %s1303_s5 }
 0x2e5   : > { %p932_p3 = scmp.lt.s32.totalorder %s930_s11, %s926_s17 }
 0x2e6   : > { %p928_p5 = pnand %p927_p7, %p1332_p13 }
 0x2e7   : > { %p933_p12 = por %p932_p3, %p931_p11 }
 0x2e8   : > { %p929_p8 = pneg %p928_p5 }
 0x2ea   : > { %p934_p9 = pnand %p933_p12, %p929_p8 }
 0x2ec   : > { %937 = shalt.err (!%p934_p9)
}
 0x2ed   : > { %s1001_s30 = smov 256   ;;  %s1002_s26 = smov 16  }
 0x2ee   : > { %701 = dma.vmem_to_hbm [thread:$0]  (%p1332_p13), %s1250_s3, 512, %s1255_s10, %s509_s12, %s1001_s30, %s1001_s30, %s1002_s26  }
 0x2ef PF: > { %s537_s24 = sand.u32 1, %s976_s18   ;;  %p1333_p0 = scmp.ne.s32.totalorder %s1316_s25, 0 }
 0x2f0   : > { %p1334_p2 = scmp.ge.s32.totalorder %s988_s21, 2  ;;  %s538_s2 = scalar_lea.sflag [#allocation4], %s537_s24 }
 0x2f2   : > { %p721_p10 = pnand %p1334_p2, %p1333_p0 }
 0x2f4   : > { %p722_p1 = pneg %p721_p10 }
 0x2f6   : > { %971 = dma.done.wait (%p722_p1), %s538_s2, 512  }
 0x2f7   : > { %973 = vsyncadd (%p722_p1), %s538_s2, 4294966784  ;;  %p22_p4 = scmp.ge.s32.totalorder %s1122_s28, 4   ;;  %s1335_s18 = smov %s980_s19 }
 0x2f8   : > { %s1336_s19 = smov %s984_s20  ;;  %s1337_s20 = smov %s1132_s6 }
 0x2f9   : > { %s1338_s21 = smov %s1122_s28  ;;  %24 = sbr.rel (!%p22_p4) target bundleno = 13 (0xd), region = 110 }
 0x2fe   :  { %543 = vsyncpa [#allocation3], 1 }
 0x2ff   :  { %545 = vsyncpa [#allocation3 + $0x1], 1 }
 0x300   :  { %546 = vsyncpa [#allocation6], 1 }
 0x301   :  { %548 = vsyncpa [#allocation6 + $0x1], 1 }
 0x302   :  { %549 = vsyncpa [#allocation9], 1 }
 0x303   :  { %550 = vsyncpa [#allocation4], 1 }
 0x304   :  { %552 = vsyncpa [#allocation4 + $0x1], 1 }

</bundles_post_ra>
